<compile_context>
chip_gen: v5e
topology: v5e:2x2
jax: 0.10.0
libtpu: 0.0.40
codegen_flags: <defaults>
</compile_context>

<pallas_src>
import functools

import jax
import jax.numpy as jnp
from jax import lax
from jax.experimental import pallas as pl
from jax.experimental.pallas import tpu as pltpu

_LANE = 128
_MIN_K_STEPS_PER_CORE = 4          # guarantee some pipelining when H*W allows
_CORE_PARALLEL = getattr(pltpu, "CORE_PARALLEL", "parallel")


def _round_up(x, m):
    return ((x + m - 1) // m) * m


@functools.lru_cache(maxsize=1)
def _tpu_setup():
    """Generation-aware (core_split, feature_tile_budget_bytes, vmem_cap_bytes)."""
    vmem_cap = 64 << 20            # conservative default = v7x per-TC VMEM
    num_cores = 1
    try:
        get_info = getattr(pltpu, "get_tpu_info", None)
        if get_info is not None:
            info = get_info()
            vmem_cap = int(getattr(info, "vmem_capacity_bytes", vmem_cap)) or vmem_cap
            for attr in ("num_cores", "core_count", "num_tensorcores",
                         "tensorcore_count", "cores_per_chip"):
                v = getattr(info, attr, None)
                if v:
                    num_cores = int(v)
                    break
    except Exception:
        pass
    try:
        kind = jax.devices()[0].device_kind.lower()
    except Exception:
        kind = ""
    if "v7" in kind:
        num_cores = max(num_cores, 2)      # v7x: 2 TensorCores per chip
    num_cores = max(1, num_cores)
    # Feature-tile budget (double-buffered): big tiles on 128 MiB chips (v5e/v6e),
    # tighter on v7x's 64 MiB-per-TC VMEM.
    budget = (48 << 20) if vmem_cap >= (96 << 20) else (24 << 20)
    return num_cores, budget, vmem_cap


def _plan_tiles(c, hw, dtype_bytes, n_split, budget):
    """Pick (tk, n_tiles): lane-aligned K-chunks of width tk covering H*W."""
    # Cap tk by the double-buffered VMEM budget for the (C, TK) tile ...
    cap = max(_LANE, (budget // (2 * c * dtype_bytes)) // _LANE * _LANE)
    # ... and also so there are at least _MIN_K_STEPS_PER_CORE steps per core
    # (keeps the auto-pipeline's DMA overlapped) whenever H*W is large enough.
    min_total_steps = _MIN_K_STEPS_PER_CORE * n_split
    if hw >= min_total_steps * _LANE:
        cap = min(cap, max(_LANE, (hw // min_total_steps) // _LANE * _LANE))
    n_min = _round_up(max(1, -(-hw // cap)), n_split)
    # Prefer a tile count that divides H*W into lane-aligned tiles exactly
    # (avoids a zero-padding copy of the feature matrix in the wrapper).
    for n_tiles in range(n_min, n_min + 8 * n_split, n_split):
        if hw % n_tiles == 0 and (hw // n_tiles) % _LANE == 0:
            return hw // n_tiles, n_tiles
    n_tiles = n_min
    tk = _round_up(-(-hw // n_tiles), _LANE)
    return tk, n_tiles


def _vmem_limit(c, tk, dtype_bytes, vmem_cap):
    # double-buffered (C, TK) feature tile + resident f32 (C, C) accumulator / target
    # + fixed headroom, clamped below this generation's physical VMEM.
    need = 2 * c * tk * dtype_bytes + 4 * c * c * 4 + (4 << 20)
    return int(min(need, vmem_cap - (4 << 20)))


def _prep_features(x, cast_to_bf16):
    """Flatten NCHW (b == 1) to the (C, H*W) feature matrix, padded to the tile grid."""
    b, c, h, w = x.shape
    if b != 1:
        # PyTorch's x.view(c, h*w) itself requires batch size 1.
        raise ValueError("StyleLoss.gram_matrix uses x.view(c, h*w); batch size must be 1.")
    hw = h * w
    feats = x.reshape(c, hw)
    if cast_to_bf16 and feats.dtype == jnp.float32:
        # Bandwidth-bound problem: halve feature bytes; MXU still accumulates in f32.
        feats = feats.astype(jnp.bfloat16)
    n_split, budget, vmem_cap = _tpu_setup()
    dtype_bytes = jnp.dtype(feats.dtype).itemsize
    tk, n_tiles = _plan_tiles(c, hw, dtype_bytes, n_split, budget)
    hw_pad = tk * n_tiles
    if hw_pad != hw:
        # Zero columns contribute nothing to F @ F.T, so zero-padding is exact.
        feats = jnp.pad(feats, ((0, 0), (0, hw_pad - hw)))
    vmem_limit = _vmem_limit(c, tk, dtype_bytes, vmem_cap)
    return feats, c, hw, tk, n_tiles, n_split, vmem_limit


# ---------------------------------------------------------------------------
# Single-TC fused kernels (v5e / v6e): one pallas_call, no partials round-trip
# ---------------------------------------------------------------------------
def _gram_kernel(f_ref, g_ref, *, inv_norm):
    k = pl.program_id(0)

    @pl.when(k == 0)
    def _():
        g_ref[...] = jnp.zeros_like(g_ref)

    f = f_ref[...]
    # dim-1/dim-1 contraction == F @ F.T without materializing the transpose.
    g_ref[...] += lax.dot_general(
        f, f, dimension_numbers=(((1,), (1,)), ((), ())),
        preferred_element_type=jnp.float32)

    @pl.when(k == pl.num_programs(0) - 1)
    def _():
        g_ref[...] = g_ref[...] * inv_norm


def _style_loss_kernel(f_ref, tgt_ref, loss_ref, acc_ref, *, inv_norm, inv_count):
    k = pl.program_id(0)

    @pl.when(k == 0)
    def _():
        acc_ref[...] = jnp.zeros_like(acc_ref)

    f = f_ref[...]
    acc_ref[...] += lax.dot_general(
        f, f, dimension_numbers=(((1,), (1,)), ((), ())),
        preferred_element_type=jnp.float32)

    @pl.when(k == pl.num_programs(0) - 1)
    def _():
        g = acc_ref[...] * inv_norm          # single final scale
        diff = g - tgt_ref[...]
        sq = diff * diff
        s = jnp.sum(jnp.sum(sq, axis=1, keepdims=True), axis=0, keepdims=True)
        loss_ref[...] = s * inv_count


# ---------------------------------------------------------------------------
# Multi-TC path (v7x): CORE_PARALLEL partial grams + tiny combine kernel
# ---------------------------------------------------------------------------
def _partial_gram_kernel(f_ref, partial_ref):
    @pl.when(pl.program_id(1) == 0)
    def _():
        partial_ref[...] = jnp.zeros_like(partial_ref)

    f = f_ref[...]
    partial_ref[...] += lax.dot_general(
        f, f, dimension_numbers=(((1,), (1,)), ((), ())),
        preferred_element_type=jnp.float32)


def _partial_grams(feats, c, tk, n_tiles, n_split, vmem_limit):
    k_per_core = n_tiles // n_split
    return pl.pallas_call(
        _partial_gram_kernel,
        out_shape=jax.ShapeDtypeStruct((n_split, c, c), jnp.float32),
        grid_spec=pltpu.PrefetchScalarGridSpec(
            num_scalar_prefetch=0,
            grid=(n_split, k_per_core),
            in_specs=[pl.BlockSpec((c, tk), lambda p, k: (0, p * k_per_core + k))],
            out_specs=pl.BlockSpec((None, c, c), lambda p, k: (p, 0, 0)),
        ),
        compiler_params=pltpu.CompilerParams(
            dimension_semantics=(_CORE_PARALLEL, "arbitrary"),
            vmem_limit_bytes=vmem_limit,
        ),
    )(feats)


def _combine_gram_kernel(partial_ref, g_ref, *, inv_norm):
    g_ref[...] = jnp.sum(partial_ref[...], axis=0) * inv_norm


def _combine_loss_kernel(partial_ref, tgt_ref, loss_ref, *, inv_norm, inv_count):
    g = jnp.sum(partial_ref[...], axis=0) * inv_norm
    diff = g - tgt_ref[...]
    sq = diff * diff
    s = jnp.sum(jnp.sum(sq, axis=1, keepdims=True), axis=0, keepdims=True)
    loss_ref[...] = s * inv_count


# ---------------------------------------------------------------------------
# Wrappers
# ---------------------------------------------------------------------------
def gram_matrix(x, *, cast_to_bf16=True):
    """Pallas gram matrix of an NCHW tensor (b == 1): (F @ F.T) / (c*h*w)."""
    feats, c, hw, tk, n_tiles, n_split, vmem_limit = _prep_features(x, cast_to_bf16)
    inv_norm = 1.0 / float(c * hw)
    if n_split == 1:
        return pl.pallas_call(
            functools.partial(_gram_kernel, inv_norm=inv_norm),
            out_shape=jax.ShapeDtypeStruct((c, c), jnp.float32),
            grid_spec=pltpu.PrefetchScalarGridSpec(
                num_scalar_prefetch=0,
                grid=(n_tiles,),
                in_specs=[pl.BlockSpec((c, tk), lambda k: (0, k))],
                out_specs=pl.BlockSpec((c, c), lambda k: (0, 0)),
            ),
            compiler_params=pltpu.CompilerParams(
                dimension_semantics=("arbitrary",),
                vmem_limit_bytes=vmem_limit,
            ),
        )(feats)
    partials = _partial_grams(feats, c, tk, n_tiles, n_split, vmem_limit)
    return pl.pallas_call(
        functools.partial(_combine_gram_kernel, inv_norm=inv_norm),
        out_shape=jax.ShapeDtypeStruct((c, c), jnp.float32),
        grid=(1,),
        in_specs=[pl.BlockSpec((n_split, c, c), lambda i: (0, 0, 0))],
        out_specs=pl.BlockSpec((c, c), lambda i: (0, 0)),
    )(partials)


def style_loss_forward(x, target_gram, *, cast_to_bf16=True):
    """loss = mean((gram(x) - target_gram)^2)."""
    feats, c, hw, tk, n_tiles, n_split, vmem_limit = _prep_features(x, cast_to_bf16)
    inv_norm = 1.0 / float(c * hw)
    inv_count = 1.0 / float(c * c)
    target_gram = target_gram.astype(jnp.float32)

    if n_split == 1:
        # Fully fused: gram accumulation + MSE epilogue in one kernel launch.
        out = pl.pallas_call(
            functools.partial(_style_loss_kernel, inv_norm=inv_norm, inv_count=inv_count),
            out_shape=jax.ShapeDtypeStruct((1, 1), jnp.float32),
            grid_spec=pltpu.PrefetchScalarGridSpec(
                num_scalar_prefetch=0,
                grid=(n_tiles,),
                in_specs=[
                    pl.BlockSpec((c, tk), lambda k: (0, k)),
                    pl.BlockSpec((c, c), lambda k: (0, 0)),   # target: fetched once, resident
                ],
                out_specs=pl.BlockSpec((1, 1), lambda k: (0, 0)),
                scratch_shapes=[pltpu.VMEM((c, c), jnp.float32)],
            ),
            compiler_params=pltpu.CompilerParams(
                dimension_semantics=("arbitrary",),
                vmem_limit_bytes=vmem_limit,
            ),
        )(feats, target_gram)
        return out[0, 0]

    # v7x: core-split partial grams, then a tiny combine + MSE kernel.
    partials = _partial_grams(feats, c, tk, n_tiles, n_split, vmem_limit)
    out = pl.pallas_call(
        functools.partial(_combine_loss_kernel, inv_norm=inv_norm, inv_count=inv_count),
        out_shape=jax.ShapeDtypeStruct((1, 1), jnp.float32),
        grid=(1,),
        in_specs=[
            pl.BlockSpec((n_split, c, c), lambda i: (0, 0, 0)),
            pl.BlockSpec((c, c), lambda i: (0, 0)),
        ],
        out_specs=pl.BlockSpec((1, 1), lambda i: (0, 0)),
    )(partials, target_gram)
    return out[0, 0]


class StyleLoss:
    """JAX/Pallas equivalent of the PyTorch StyleLoss module (forward only)."""

    def __init__(self, target, *, cast_to_bf16=True):
        # Target gram precomputed once; .detach() is a no-op here (no autograd tape).
        self.cast_to_bf16 = cast_to_bf16
        self.target_gram = gram_matrix(target, cast_to_bf16=cast_to_bf16)

    def __call__(self, x):
        return style_loss_forward(x, self.target_gram, cast_to_bf16=self.cast_to_bf16)


# ---------------------------------------------------------------------------
# Demo / self-check
# ---------------------------------------------------------------------------
if __name__ == "__main__":
    key = jax.random.PRNGKey(0)
    k_t, k_x = jax.random.split(key)

    # Small shapes consistent with the module: b=1 (required by view(c, h*w)),
    # c=8 channels, 16x16 spatial.
    b, c, h, w = 1, 8, 16, 16
    target = jax.random.normal(k_t, (b, c, h, w), dtype=jnp.float32)
    x = jax.random.normal(k_x, (b, c, h, w), dtype=jnp.float32)

    # Pure-JAX reference of the forward semantics.
    def ref_gram(t):
        f = t.reshape(c, h * w)
        return (f @ f.T) / (c * h * w)

    ref_loss = jnp.mean((ref_gram(x) - ref_gram(target)) ** 2)

    # Exact path (no bf16 cast): matches the f32 reference tightly.
    style_loss_f32 = StyleLoss(target, cast_to_bf16=False)
    loss_f32 = jax.block_until_ready(style_loss_f32(x))
    assert jnp.allclose(loss_f32, ref_loss, rtol=1e-4, atol=1e-5), (loss_f32, ref_loss)
    assert jnp.allclose(style_loss_f32.target_gram, ref_gram(target), rtol=1e-4, atol=1e-5)

    # Default fast path: f32 activations are cast to bf16 features (f32 MXU accumulation).
    style_loss_fast = StyleLoss(target)
    loss_fast = jax.block_until_ready(style_loss_fast(x))
    assert jnp.isfinite(loss_fast)
    assert jnp.allclose(loss_fast, ref_loss, rtol=5e-2, atol=1e-5), (loss_fast, ref_loss)

    print("KERNEL_OK")
</pallas_src>

<mosaic_0001>
module attributes {stable_mosaic.version = 11 : i64} {
  func.func @_gram_kernel(%arg0: i32, %arg1: memref<8x256xf32, #tpu.memory_space<vmem>>, %arg2: memref<8x8xf32, #tpu.memory_space<vmem>>) attributes {dimension_semantics = [#tpu.dimension_semantics<arbitrary>], iteration_bounds = array<i64: 1>, scalar_prefetch = 0 : i64, scratch_operands = 0 : i64, tpu.core_type = #tpu.core_type<tc>, window_params = [{transform_indices = @transform_0, window_bounds = array<i64: 8, 256>}, {pipeline_mode = #tpu.pipeline_mode<synchronous>, transform_indices = @transform_1, window_bounds = array<i64: 8, 8>}]} {
    %c0_i32 = arith.constant 0 : i32
    %0 = arith.cmpi eq, %arg0, %c0_i32 : i32
    %1 = arith.extui %0 : i1 to i32
    %c0_i32_0 = arith.constant 0 : i32
    %2 = arith.cmpi ne, %1, %c0_i32_0 : i32
    scf.if %2 {
      %cst_8 = arith.constant 0.000000e+00 : f32
      %11 = vector.broadcast %cst_8 : f32 to vector<8x8xf32>
      %c0_9 = arith.constant 0 : index
      %c0_10 = arith.constant 0 : index
      %12 = vector.load %arg2[%c0_9, %c0_10] : memref<8x8xf32, #tpu.memory_space<vmem>>, vector<8x8xf32>
      tpu.vector_store %arg2[%c0_9, %c0_10], %11 {strides = array<i32>} : memref<8x8xf32, #tpu.memory_space<vmem>>, vector<8x8xf32>,
    } else {
    }
    %c0 = arith.constant 0 : index
    %c0_1 = arith.constant 0 : index
    %3 = vector.load %arg1[%c0, %c0_1] : memref<8x256xf32, #tpu.memory_space<vmem>>, vector<8x256xf32>
    %c0_2 = arith.constant 0 : index
    %c0_3 = arith.constant 0 : index
    %4 = vector.load %arg2[%c0_2, %c0_3] : memref<8x8xf32, #tpu.memory_space<vmem>>, vector<8x8xf32>
    %cst = arith.constant dense<0.000000e+00> : vector<8x8xf32>
    %5 = tpu.matmul %3, %3, %cst {dimension_numbers = #tpu.dot_dimension_numbers<[1], [1], [0], [0], [0, 0, 1, 0], [], []>} : vector<8x256xf32>, vector<8x256xf32>, vector<8x8xf32> -> vector<8x8xf32>
    %6 = arith.addf %4, %5 : vector<8x8xf32>
    %c0_4 = arith.constant 0 : index
    %c0_5 = arith.constant 0 : index
    %7 = vector.load %arg2[%c0_4, %c0_5] : memref<8x8xf32, #tpu.memory_space<vmem>>, vector<8x8xf32>
    tpu.vector_store %arg2[%c0_4, %c0_5], %6 {strides = array<i32>} : memref<8x8xf32, #tpu.memory_space<vmem>>, vector<8x8xf32>,
    %c0_i32_6 = arith.constant 0 : i32
    %8 = arith.cmpi eq, %arg0, %c0_i32_6 : i32
    %9 = arith.extui %8 : i1 to i32
    %c0_i32_7 = arith.constant 0 : i32
    %10 = arith.cmpi ne, %9, %c0_i32_7 : i32
    scf.if %10 {
      %c0_8 = arith.constant 0 : index
      %c0_9 = arith.constant 0 : index
      %11 = vector.load %arg2[%c0_8, %c0_9] : memref<8x8xf32, #tpu.memory_space<vmem>>, vector<8x8xf32>
      %cst_10 = arith.constant 4.8828125E-4 : f32
      %12 = vector.broadcast %cst_10 : f32 to vector<8x8xf32>
      %13 = arith.mulf %11, %12 : vector<8x8xf32>
      %c0_11 = arith.constant 0 : index
      %c0_12 = arith.constant 0 : index
      %14 = vector.load %arg2[%c0_11, %c0_12] : memref<8x8xf32, #tpu.memory_space<vmem>>, vector<8x8xf32>
      tpu.vector_store %arg2[%c0_11, %c0_12], %13 {strides = array<i32>} : memref<8x8xf32, #tpu.memory_space<vmem>>, vector<8x8xf32>,
    } else {
    }
    return
  }
  func.func @transform_0(%arg0: i32) -> (i32, i32) {
    %c0_i32 = arith.constant 0 : i32
    %c0_i32_0 = arith.constant 0 : i32
    return %c0_i32, %arg0 : i32, i32
  }
  func.func @transform_1(%arg0: i32) -> (i32, i32) {
    %c0_i32 = arith.constant 0 : i32
    %c0_i32_0 = arith.constant 0 : i32
    %c0_i32_1 = arith.constant 0 : i32
    return %c0_i32, %c0_i32_0 : i32, i32
  }
}

</mosaic_0001>

<bundles_post_ra>
// kernel: tpu_custom_call.1
= control target key start
LH: loop header
LB: loop body
LE: loop exit
PB: predicated region body
PF: predicated region fallthrough
CT: control target
= control target key end

     0   :  { %6 = vsyncpa [#allocation3], 0  ;;  %s175_s0 = inlined_call_operand.hbm [shape: f32[8,256], index: 0, kind: input, shape index: {}]   ;;  %s176_s1 = inlined_call_operand.hbm [shape: f32[8,8], index: 1, kind: output, shape index: {}]  }
   0x1   :  { %7 = vsyncpa [#allocation4], 0  ;;  %s13_s8 = sshll.u32 %s175_s0, 4  ;;  %s153_s9 = smov [#allocation2]   ;;  %s14_s8 = int_to_ptr.hbm [resolvable:$true] %s13_s8 }
   0x2   :  { %s15_s10 = sshll.u32 %s153_s9, 4  ;;  %s16_s10 = int_to_ptr.vmem [resolvable:$true] %s15_s10 }
   0x3   :  { %18 = dma.hbm_to_vmem [thread:$0]  %s14_s8, 256, %s16_s10, [#allocation3]  }
   0x4   :  { %149 = dma.done.wait [#allocation3], 256  }
   0x5   :  { %150 = vsyncadd [#allocation3], 4294967040  ;;  %v29_v0 = vld [vmem:[#allocation2] sm:$0xff]  ;;  %v30_v1 = vld [vmem:[#allocation2 + $0x8] sm:$0xff]  ;;  %vm27_vm0 = vcmask 64512   ;;  %v154_v2 = vmov 0.0  }
   0x6   :  { %47 = vmatpush.xpose.msra.mxu0 %v29_v0  ;;  %67 = vmatpush.xpose.msra.mxu1 %v30_v1  ;;  %28 = vst.msk [vmem:[#allocation5] sm:$0xff] %vm27_vm0, %v154_v2  ;;  %s155_s0 = smov [#allocation5]   ;;  %s88_s14 = sshll.u32 %s176_s1, 4  ;;  %s89_s14 = int_to_ptr.hbm [resolvable:$true] %s88_s14 }
   0x7   :  { %s86_s11 = sshll.u32 %s155_s0, 4  ;;  %s87_s11 = int_to_ptr.vmem [resolvable:$true] %s86_s11 }
   0x9   :  { %48 = vmatmul.f32.vlgmr.msra.gmra.mxu0 %v29_v0  ;;  %68 = vmatmul.f32.vlgmr.msra.gmra.mxu1 %v30_v1 }
   0xd   :  { %v31_v4 = vld [vmem:[#allocation5] sm:$0xff] }
  0x86   :  { %v49_v3 = vpop.f32.mrf.mxu0  ;;  %v69_v5 = vpop.f32.mrf.mxu1 }
  0x87   :  { %v70_v6 = vadd.f32 %v69_v5, %v49_v3 }
  0x89   :  { %v72_v7 = vadd.f32 %v70_v6, %v31_v4 }
  0x8b   :  { %74 = vst.msk [vmem:[#allocation5] sm:$0xff] %vm27_vm0, %v72_v7 }
  0x92   :  { %v78_v8 = vld [vmem:[#allocation5] sm:$0xff] }
  0x93   :  { %v79_v9 = vmul.f32 0.00048828125, %v78_v8 }
  0x95   :  { %80 = vst.msk [vmem:[#allocation5] sm:$0xff] %vm27_vm0, %v79_v9 }
  0x96   :  { %91 = dma.vmem_to_hbm [thread:$0]  %s87_s11, 128, %s89_s14, [#allocation4]  }
  0x97   :  { %151 = dma.done.wait [#allocation4], 128  }
  0x98   :  { %152 = vsyncadd [#allocation4], 4294967168 }
  0x99   :  { %96 = vsyncpa [#allocation3], 1 }
  0x9a   :  { %97 = vsyncpa [#allocation4], 1 }

</bundles_post_ra>
